<compile_context>
chip_gen: v6e
topology: v6e:2x2x1
jax: 0.10.0
libtpu: 0.0.40
codegen_flags: <defaults>
</compile_context>

<pallas_src>
import functools

import jax
import jax.numpy as jnp
from jax.experimental import pallas as pl
from jax.experimental.pallas import tpu as pltpu


def _round_up(x, m):
    return (x + m - 1) // m * m


def _pick_tm(m):
    mr = _round_up(m, 8)
    for t in (512, 256, 128):
        if mr >= t and mr % t == 0:
            return t
    return 128 if mr >= 128 else mr


def _pick_tn(n):
    nr = _round_up(n, 128)
    for t in (512, 256, 128):
        if nr % t == 0:
            return t
    return 128


def _pick_tk(k):
    kr = _round_up(k, 128)
    return kr if kr <= 4608 else 2048


# --------------------------- Pallas matmul kernels ---------------------------

def _mm_kernel(x_ref, w_ref, s_ref, b_ref, o_ref, *, relu):
    """o = maybe_relu((x @ w) * scale + bias); f32 accumulation in the output block."""
    k = pl.program_id(2)

    @pl.when(k == 0)
    def _init():
        o_ref[...] = jnp.zeros_like(o_ref)

    o_ref[...] += jnp.dot(x_ref[...].astype(jnp.bfloat16),
                          w_ref[...].astype(jnp.bfloat16),
                          preferred_element_type=jnp.float32)

    @pl.when(k == pl.num_programs(2) - 1)
    def _finish():
        r = o_ref[...] * s_ref[...] + b_ref[...]
        if relu:
            r = jnp.maximum(r, 0.0)
        o_ref[...] = r


def _mm_res_kernel(x_ref, w_ref, s_ref, b_ref, res_ref, o_ref, *, relu):
    """Same as _mm_kernel but fuses a residual add into the epilogue."""
    k = pl.program_id(2)

    @pl.when(k == 0)
    def _init():
        o_ref[...] = jnp.zeros_like(o_ref)

    o_ref[...] += jnp.dot(x_ref[...].astype(jnp.bfloat16),
                          w_ref[...].astype(jnp.bfloat16),
                          preferred_element_type=jnp.float32)

    @pl.when(k == pl.num_programs(2) - 1)
    def _finish():
        r = o_ref[...] * s_ref[...] + b_ref[...] + res_ref[...]
        if relu:
            r = jnp.maximum(r, 0.0)
        o_ref[...] = r


@functools.partial(jax.jit, static_argnames=("relu",))
def matmul_scale_bias(x, w, scale, bias, residual=None, *, relu=False):
    """out = maybe_relu((x @ w) * scale + bias [+ residual]).

    x: (M, K) f32/bf16, w: (K, N) (bf16 or f32), scale/bias: (N,) f32,
    residual: optional (M, N) f32 fused into the epilogue.
    The MXU runs in bf16; the f32 accumulator is the output block itself.
    """
    M, K = x.shape
    _, N = w.shape
    tm, tn, tk = _pick_tm(M), _pick_tn(N), _pick_tk(K)
    Mp, Np, Kp = _round_up(M, tm), _round_up(N, tn), _round_up(K, tk)

    xp = x if (Mp, Kp) == (M, K) else jnp.pad(x, ((0, Mp - M), (0, Kp - K)))
    wp = w if (Kp, Np) == (K, N) else jnp.pad(w, ((0, Kp - K), (0, Np - N)))
    sp = jnp.pad(scale.astype(jnp.float32).reshape(1, N), ((0, 0), (0, Np - N)))
    bp = jnp.pad(bias.astype(jnp.float32).reshape(1, N), ((0, 0), (0, Np - N)))

    in_specs = [
        pl.BlockSpec((tm, tk), lambda i, j, k: (i, k)),
        pl.BlockSpec((tk, tn), lambda i, j, k: (k, j)),
        pl.BlockSpec((1, tn), lambda i, j, k: (0, j)),
        pl.BlockSpec((1, tn), lambda i, j, k: (0, j)),
    ]
    args = [xp, wp, sp, bp]
    if residual is None:
        kernel = functools.partial(_mm_kernel, relu=relu)
    else:
        rp = residual.astype(jnp.float32)
        if (Mp, Np) != (M, N):
            rp = jnp.pad(rp, ((0, Mp - M), (0, Np - N)))
        in_specs.append(pl.BlockSpec((tm, tn), lambda i, j, k: (i, j)))
        args.append(rp)
        kernel = functools.partial(_mm_res_kernel, relu=relu)

    out = pl.pallas_call(
        kernel,
        out_shape=jax.ShapeDtypeStruct((Mp, Np), jnp.float32),
        grid_spec=pltpu.PrefetchScalarGridSpec(
            num_scalar_prefetch=0,
            grid=(Mp // tm, Np // tn, Kp // tk),
            in_specs=in_specs,
            out_specs=pl.BlockSpec((tm, tn), lambda i, j, k: (i, j)),
        ),
        compiler_params=pltpu.CompilerParams(
            dimension_semantics=("parallel", "parallel", "arbitrary"),
            vmem_limit_bytes=48 * 1024 * 1024),
    )(*args)
    return out[:M, :N]


# --------------------- conv = (im2col-or-direct) + fused matmul ---------------

@functools.partial(jax.jit, static_argnames=("stride", "pad", "relu"))
def conv2d_fused(x, w, scale, bias, residual=None, *, stride=1, pad=0, relu=False):
    """Conv2d (no groups/dilation) fused with per-channel scale/bias (folded BN),
    optional residual add and optional ReLU.  x: NHWC f32, w: (KH, KW, Cin, Cout)."""
    KH, KW, Cin, Cout = w.shape
    N, H, W_, _ = x.shape

    if KH == 1 and KW == 1 and pad == 0:
        # 1x1 conv: direct matmul, no im2col / patch materialization at all.
        xs = x if stride == 1 else x[:, ::stride, ::stride, :]
        _, oh, ow, _ = xs.shape
        rm = None if residual is None else residual.reshape(N * oh * ow, Cout)
        out = matmul_scale_bias(xs.reshape(N * oh * ow, Cin), w.reshape(Cin, Cout),
                                scale, bias, residual=rm, relu=relu)
        return out.reshape(N, oh, ow, Cout)

    # KxK conv: bf16 im2col feeding a single full-K fused matmul.
    # TODO(synk): the KH*KW-expanded patch matrix is still materialized in HBM (now in
    # bf16); a direct-conv kernel that accumulates the taps from the un-expanded input
    # (kernel-tap grid axis / manual DMA of shifted windows) would remove the rest.
    xb = x.astype(jnp.bfloat16)
    if pad:
        xb = jnp.pad(xb, ((0, 0), (pad, pad), (pad, pad), (0, 0)))
    Hp, Wp = H + 2 * pad, W_ + 2 * pad
    oh = (Hp - KH) // stride + 1
    ow = (Wp - KW) // stride + 1
    cols = []
    for i in range(KH):
        for j in range(KW):
            cols.append(xb[:, i:i + (oh - 1) * stride + 1:stride,
                           j:j + (ow - 1) * stride + 1:stride, :])
    patches = jnp.stack(cols, axis=3).reshape(N * oh * ow, KH * KW * Cin)
    rm = None if residual is None else residual.reshape(N * oh * ow, Cout)
    out = matmul_scale_bias(patches, w.reshape(KH * KW * Cin, Cout),
                            scale, bias, residual=rm, relu=relu)
    return out.reshape(N, oh, ow, Cout)


@jax.jit
def maxpool_3x3_s2_p1(x):
    """nn.MaxPool2d(kernel_size=3, stride=2, padding=1) on NHWC input.
    Plain-JAX pairwise max tree (per perf review): purely memory bound; XLA fuses the
    9 shifted reads into one pass with no 9x stacked HBM tensor / giant VMEM block."""
    N, H, W, C = x.shape
    xp = jnp.pad(x, ((0, 0), (1, 1), (1, 1), (0, 0)),
                 constant_values=float("-inf"))
    oh = (H + 2 - 3) // 2 + 1
    ow = (W + 2 - 3) // 2 + 1
    out = None
    for i in range(3):
        for j in range(3):
            s = xp[:, i:i + 2 * (oh - 1) + 1:2, j:j + 2 * (ow - 1) + 1:2, :]
            out = s if out is None else jnp.maximum(out, s)
    return out


# ----------------------------- parameter init --------------------------------

def _he_conv(key, kh, kw, cin, cout, gain=0.5):
    std = gain * (2.0 / (kh * kw * cin)) ** 0.5
    return (std * jax.random.normal(key, (kh, kw, cin, cout))).astype(jnp.bfloat16)


def _bn_params(key, c, eps=1e-5):
    # TODO(synk): PyTorch default (train-mode) BN uses batch statistics; we fold
    # eval-mode running stats (mean=0, var=1 at init) into a per-channel affine.
    k1, k2 = jax.random.split(key)
    gamma = 1.0 + 0.1 * jax.random.normal(k1, (c,), jnp.float32)
    beta = 0.05 * jax.random.normal(k2, (c,), jnp.float32)
    scale = gamma / jnp.sqrt(1.0 + eps)
    bias = beta
    return scale, bias


def _init_bottleneck(key, inplanes, planes, downsample):
    ks = jax.random.split(key, 8)
    p = {
        "conv1_w": _he_conv(ks[0], 1, 1, inplanes, planes),
        "conv2_w": _he_conv(ks[2], 3, 3, planes, planes),
        "conv3_w": _he_conv(ks[4], 1, 1, planes, planes * 4),
    }
    p["bn1_scale"], p["bn1_bias"] = _bn_params(ks[1], planes)
    p["bn2_scale"], p["bn2_bias"] = _bn_params(ks[3], planes)
    p["bn3_scale"], p["bn3_bias"] = _bn_params(ks[5], planes * 4)
    if downsample:
        p["down_w"] = _he_conv(ks[6], 1, 1, inplanes, planes * 4)
        p["down_scale"], p["down_bias"] = _bn_params(ks[7], planes * 4)
    return p


def _init_resnet101(key):
    ks = jax.random.split(key, 5)
    params = {"conv1_w": _he_conv(ks[0], 7, 7, 3, 64)}
    params["bn1_scale"], params["bn1_bias"] = _bn_params(ks[1], 64)
    cfg = [(64, 3), (128, 4), (256, 23), (512, 3)]      # ResNet-101 block counts
    inplanes = 64
    layers = []
    lkeys = jax.random.split(ks[2], len(cfg))
    for li, (planes, nblocks) in enumerate(cfg):
        bkeys = jax.random.split(lkeys[li], nblocks)
        blocks = []
        for bi in range(nblocks):
            blocks.append(_init_bottleneck(bkeys[bi], inplanes, planes,
                                           downsample=(bi == 0)))
            inplanes = planes * 4
        layers.append(blocks)
    params["layers"] = layers
    params["fc_w"] = ((1.0 / 2048 ** 0.5) *
                      jax.random.normal(ks[3], (2048, 1000))).astype(jnp.float32)
    params["fc_b"] = (0.01 * jax.random.normal(ks[4], (1000,))).astype(jnp.float32)
    return params


def init_temporalnet(key, n_classes=6, n_consecutive=1):
    ks = jax.random.split(key, 5)
    params = {
        "in_cnn_w": _he_conv(ks[0], 3, 3, 2 * n_consecutive, 3, gain=1.0),
        "in_cnn_b": (0.01 * jax.random.normal(ks[1], (3,))).astype(jnp.float32),
        "resnet": _init_resnet101(ks[2]),
        "fc_w": ((1.0 / 1000 ** 0.5) *
                 jax.random.normal(ks[3], (1000, n_classes))).astype(jnp.float32),
        "fc_b": (0.01 * jax.random.normal(ks[4], (n_classes,))).astype(jnp.float32),
    }
    return params


# ------------------------------- forward pass --------------------------------

def _bottleneck_forward(x, p, stride):
    if "down_w" in p:
        identity = conv2d_fused(x, p["down_w"], p["down_scale"], p["down_bias"],
                                stride=stride, pad=0, relu=False)
    else:
        identity = x
    out = conv2d_fused(x, p["conv1_w"], p["bn1_scale"], p["bn1_bias"],
                       stride=1, pad=0, relu=True)
    out = conv2d_fused(out, p["conv2_w"], p["bn2_scale"], p["bn2_bias"],
                       stride=stride, pad=1, relu=True)
    # conv3 + BN + residual add + ReLU fused into a single matmul epilogue.
    out = conv2d_fused(out, p["conv3_w"], p["bn3_scale"], p["bn3_bias"],
                       residual=identity, stride=1, pad=0, relu=True)
    return out


def _resnet101_features(x, params):
    x = conv2d_fused(x, params["conv1_w"], params["bn1_scale"], params["bn1_bias"],
                     stride=2, pad=3, relu=True)
    x = maxpool_3x3_s2_p1(x)
    for li, layer in enumerate(params["layers"]):
        for bi, blk in enumerate(layer):
            stride = 2 if (li > 0 and bi == 0) else 1
            x = _bottleneck_forward(x, blk, stride)
    return jnp.mean(x, axis=(1, 2))                    # adaptive avg pool -> (N, 2048)


def temporalnet_forward(frames, params):
    """frames: (B, 2*n_consecutive, n_segments, H, W)  ->  (B, n_classes)."""
    B, C2, S, H, W = frames.shape
    # Fold segments into the batch: the whole network runs once on B*S images.
    x = jnp.transpose(frames, (0, 2, 3, 4, 1)).reshape(B * S, H, W, C2)   # NHWC
    ones3 = jnp.ones((3,), jnp.float32)
    x = conv2d_fused(x, params["in_cnn_w"], ones3, params["in_cnn_b"],
                     stride=1, pad=0, relu=False)
    feats = _resnet101_features(x, params["resnet"])                      # (B*S, 2048)

    # No nonlinearity between the ResNet fc and the temporal fc -> fold them exactly.
    w1 = params["resnet"]["fc_w"].astype(jnp.float32)
    b1 = params["resnet"]["fc_b"].astype(jnp.float32)
    w2 = params["fc_w"].astype(jnp.float32)
    b2 = params["fc_b"].astype(jnp.float32)
    wf = w1 @ w2
    bf = b1 @ w2 + b2
    ones_out = jnp.ones((wf.shape[1],), jnp.float32)
    logits = matmul_scale_bias(feats, wf, ones_out, bf, relu=False)       # (B*S, n_cls)
    return jnp.mean(logits.reshape(B, S, -1), axis=1)                     # mean over S


# ------------------------------------ main ------------------------------------

if __name__ == "__main__":
    key = jax.random.PRNGKey(0)
    pkey, xkey = jax.random.split(key)

    n_classes, n_segments, n_consecutive = 6, 3, 1
    params = init_temporalnet(pkey, n_classes=n_classes, n_consecutive=n_consecutive)

    # Small shape: 34x34 frames -> 32x32 after the 3x3 in_cnn -> 1x1 after ResNet-101.
    B, H, W = 2, 34, 34
    frames = jax.random.normal(
        xkey, (B, 2 * n_consecutive, n_segments, H, W), jnp.float32)

    out = temporalnet_forward(frames, params)
    out = jax.block_until_ready(out)
    assert out.shape == (B, n_classes), out.shape
    assert bool(jnp.all(jnp.isfinite(out)))
    print("KERNEL_OK")
</pallas_src>

<mosaic_0001>
module attributes {stable_mosaic.version = 11 : i64} {
  func.func @_mm_kernel(%arg0: i32, %arg1: i32, %arg2: i32, %arg3: memref<512x128xbf16, #tpu.memory_space<vmem>>, %arg4: memref<128x128xbf16, #tpu.memory_space<vmem>>, %arg5: memref<1x128xf32, #tpu.memory_space<vmem>>, %arg6: memref<1x128xf32, #tpu.memory_space<vmem>>, %arg7: memref<512x128xf32, #tpu.memory_space<vmem>>) attributes {dimension_semantics = [#tpu.dimension_semantics<parallel>, #tpu.dimension_semantics<parallel>, #tpu.dimension_semantics<arbitrary>], iteration_bounds = array<i64: 12, 1, 1>, scalar_prefetch = 0 : i64, scratch_operands = 0 : i64, tpu.core_type = #tpu.core_type<tc>, window_params = [{transform_indices = @transform_0, window_bounds = array<i64: 512, 128>}, {transform_indices = @transform_1, window_bounds = array<i64: 128, 128>}, {transform_indices = @transform_2, window_bounds = array<i64: 1, 128>}, {transform_indices = @transform_3, window_bounds = array<i64: 1, 128>}, {transform_indices = @transform_4, window_bounds = array<i64: 512, 128>}]} {
    %c0_i32 = arith.constant 0 : i32
    %0 = arith.cmpi eq, %arg2, %c0_i32 : i32
    %1 = arith.extui %0 : i1 to i32
    %c0_i32_0 = arith.constant 0 : i32
    %2 = arith.cmpi ne, %1, %c0_i32_0 : i32
    scf.if %2 {
      %cst_10 = arith.constant 0.000000e+00 : f32
      %12 = vector.broadcast %cst_10 : f32 to vector<512x128xf32>
      %c0_11 = arith.constant 0 : index
      %c0_12 = arith.constant 0 : index
      %13 = vector.load %arg7[%c0_11, %c0_12] : memref<512x128xf32, #tpu.memory_space<vmem>>, vector<512x128xf32>
      tpu.vector_store %arg7[%c0_11, %c0_12], %12 {strides = array<i32>} : memref<512x128xf32, #tpu.memory_space<vmem>>, vector<512x128xf32>,
    } else {
    }
    %c0 = arith.constant 0 : index
    %c0_1 = arith.constant 0 : index
    %3 = vector.load %arg7[%c0, %c0_1] : memref<512x128xf32, #tpu.memory_space<vmem>>, vector<512x128xf32>
    %c0_2 = arith.constant 0 : index
    %c0_3 = arith.constant 0 : index
    %4 = vector.load %arg3[%c0_2, %c0_3] : memref<512x128xbf16, #tpu.memory_space<vmem>>, vector<512x128xbf16>
    %c0_4 = arith.constant 0 : index
    %c0_5 = arith.constant 0 : index
    %5 = vector.load %arg4[%c0_4, %c0_5] : memref<128x128xbf16, #tpu.memory_space<vmem>>, vector<128x128xbf16>
    %cst = arith.constant dense<0.000000e+00> : vector<512x128xf32>
    %6 = tpu.matmul %4, %5, %cst {dimension_numbers = #tpu.dot_dimension_numbers<[1], [0], [0], [1], [0, 0, 1, 1], [], []>} : vector<512x128xbf16>, vector<128x128xbf16>, vector<512x128xf32> -> vector<512x128xf32>
    %7 = arith.addf %3, %6 : vector<512x128xf32>
    %c0_6 = arith.constant 0 : index
    %c0_7 = arith.constant 0 : index
    %8 = vector.load %arg7[%c0_6, %c0_7] : memref<512x128xf32, #tpu.memory_space<vmem>>, vector<512x128xf32>
    tpu.vector_store %arg7[%c0_6, %c0_7], %7 {strides = array<i32>} : memref<512x128xf32, #tpu.memory_space<vmem>>, vector<512x128xf32>,
    %c0_i32_8 = arith.constant 0 : i32
    %9 = arith.cmpi eq, %arg2, %c0_i32_8 : i32
    %10 = arith.extui %9 : i1 to i32
    %c0_i32_9 = arith.constant 0 : i32
    %11 = arith.cmpi ne, %10, %c0_i32_9 : i32
    scf.if %11 {
      %c0_10 = arith.constant 0 : index
      %c0_11 = arith.constant 0 : index
      %12 = vector.load %arg7[%c0_10, %c0_11] : memref<512x128xf32, #tpu.memory_space<vmem>>, vector<512x128xf32>
      %c0_12 = arith.constant 0 : index
      %c0_13 = arith.constant 0 : index
      %13 = vector.load %arg5[%c0_12, %c0_13] : memref<1x128xf32, #tpu.memory_space<vmem>>, vector<1x128xf32>
      %14 = vector.broadcast %13 : vector<1x128xf32> to vector<512x128xf32>
      %15 = arith.mulf %12, %14 : vector<512x128xf32>
      %c0_14 = arith.constant 0 : index
      %c0_15 = arith.constant 0 : index
      %16 = vector.load %arg6[%c0_14, %c0_15] : memref<1x128xf32, #tpu.memory_space<vmem>>, vector<1x128xf32>
      %17 = vector.broadcast %16 : vector<1x128xf32> to vector<512x128xf32>
      %18 = arith.addf %15, %17 : vector<512x128xf32>
      %c0_16 = arith.constant 0 : index
      %c0_17 = arith.constant 0 : index
      %19 = vector.load %arg7[%c0_16, %c0_17] : memref<512x128xf32, #tpu.memory_space<vmem>>, vector<512x128xf32>
      tpu.vector_store %arg7[%c0_16, %c0_17], %18 {strides = array<i32>} : memref<512x128xf32, #tpu.memory_space<vmem>>, vector<512x128xf32>,
    } else {
    }
    return
  }
  func.func @transform_0(%arg0: i32, %arg1: i32, %arg2: i32) -> (i32, i32) {
    %c0_i32 = arith.constant 0 : i32
    return %arg0, %arg2 : i32, i32
  }
  func.func @transform_1(%arg0: i32, %arg1: i32, %arg2: i32) -> (i32, i32) {
    %c0_i32 = arith.constant 0 : i32
    return %arg2, %arg1 : i32, i32
  }
  func.func @transform_2(%arg0: i32, %arg1: i32, %arg2: i32) -> (i32, i32) {
    %c0_i32 = arith.constant 0 : i32
    %c0_i32_0 = arith.constant 0 : i32
    return %c0_i32, %arg1 : i32, i32
  }
  func.func @transform_3(%arg0: i32, %arg1: i32, %arg2: i32) -> (i32, i32) {
    %c0_i32 = arith.constant 0 : i32
    %c0_i32_0 = arith.constant 0 : i32
    return %c0_i32, %arg1 : i32, i32
  }
  func.func @transform_4(%arg0: i32, %arg1: i32, %arg2: i32) -> (i32, i32) {
    %c0_i32 = arith.constant 0 : i32
    return %arg0, %arg1 : i32, i32
  }
}

</mosaic_0001>

<bundles_post_ra>
// kernel: matmul_scale_bias.1
= control target key start
LH: loop header
LB: loop body
LE: loop exit
PB: predicated region body
PF: predicated region fallthrough
CT: control target
= control target key end

     0   :  { %s1872_s15 = smov 0   ;;  %s1874_s16 = smov 0   ;;  %s2171_s0 = inlined_call_operand.vmem [shape: bf16[6144,128], index: 0, kind: input, shape index: {}]   ;;  %s2172_s1 = inlined_call_operand.vmem [shape: bf16[128,128], index: 1, kind: input, shape index: {}]   ;;  %s2173_s2 = inlined_call_operand.vmem [shape: f32[1,128], index: 2, kind: input, shape index: {}]   ;;  %s2174_s3 = inlined_call_operand.vmem [shape: f32[1,128], index: 3, kind: input, shape index: {}]   ;;  %s2175_s4 = inlined_call_operand.vmem [shape: f32[6144,128], index: 4, kind: output, shape index: {}]  }
   0x1   :  { %s1876_s17 = smov 0  }
   0x2 LB: > { %s33_s18 = sadd.s32 1, %s1841_s16  ;;  %p1573_p0 = scmp.ge.s32.totalorder %s1845_s17, 1  ;;  %s1845_s17 = sphi %s1876_s17, %s14_s17   ;;  %s1841_s16 = sphi %s1874_s16, %s2177_s16   ;;  %s1837_s15 = sphi %s1872_s15, %s2176_s15  }
   0x3   : > { %p35_p1 = scmp.ge.s32.totalorder %s33_s18, 12  ;;  %p221_p2 = scmp.lt.s32.totalorder %s1845_s17, 13 }
   0x5   : > { %s2179_s18 = smov (%p35_p1, %s33_s18), 0  ;;  %p222_p3 = pnand %p1573_p0, %p221_p2 }
   0x6   : > { %s1574_s21 = sshll.u32 (!%p222_p3), %s1837_s15, 6 }
   0x7   : > { %225 = sbr.rel (%p222_p3) target bundleno = 305 (0x131), region = 36  ;;  %p268_p4 = scmp.lt.s32.totalorder (!%p222_p3), %s1574_s21, 767 }
   0xc   : > { %v1783_v0 = vld [vmem:[%s2172_s1 + $0x38] sm:$0xff]   ;;  %v1784_v1 = vld [vmem:[%s2172_s1 + $0x30] sm:$0xff]   ;;  %s2181_s21 = smov (!%p268_p4, %s1574_s21), 767  ;;  %v1785_v2 = vld [vmem:[%s2172_s1 + $0x28] sm:$0xff]  }
   0xd   : > { %1662 = vmatprep.subr.bf16.mxu0 %v1783_v0  ;;  %1742 = vmatprep.subr.bf16.mxu1 %v1783_v0  ;;  %s1575_s26 = sshll.u32 %s2181_s21, 2  ;;  %v1786_v3 = vld [vmem:[%s2172_s1 + $0x20] sm:$0xff]   ;;  %v1787_v6 = vld [vmem:[%s2172_s1 + $0x18] sm:$0xff]   ;;  %v1788_v7 = vld [vmem:[%s2172_s1 + $0x10] sm:$0xff]   ;;  %s1577_s19 = sshll.u32 %s2181_s21, 3 }
   0xe   : > { %1663 = vmatpush3.bf16.msra.mxu0 %v1783_v0  ;;  %1750 = vmatpush3.bf16.msra.mxu1 %v1783_v0  ;;  %s1905_s29 = scalar_lea.vmem %s2171_s0, %s1575_s26  ;;  %v1789_v8 = vld [vmem:[%s2172_s1 + $0x8] sm:$0xff]   ;;  %v1790_v9 = vld [vmem:[%s2172_s1] sm:$0xff]   ;;  %s1970_s25 = scalar_lea.vmem %s2175_s4, %s1577_s19 }
   0xf   : > { %1664 = vmatprep.subr.bf16.mxu0 %v1784_v1  ;;  %1743 = vmatprep.subr.bf16.mxu1 %v1784_v1  ;;  %v1791_v4 = vld [vmem:[%s1905_s29] sm:$0xff]   ;;  %v1793_v10 = vld [vmem:[%s1905_s29 + $0x8] sm:$0xff]   ;;  %v1795_v12 = vld [vmem:[%s1905_s29 + $0x10] sm:$0xff]  }
  0x10   : > { %v1792_v5 = vld [vmem:[%s1905_s29 + $0x80] sm:$0xff]   ;;  %1678 = vmatprep.mubr.bf16.mxu0 %v1791_v4  ;;  %v1794_v11 = vld [vmem:[%s1905_s29 + $0x88] sm:$0xff]   ;;  %v1796_v13 = vld [vmem:[%s1905_s29 + $0x90] sm:$0xff]  }
  0x11   : > { %1710 = vmatprep.mubr.bf16.mxu1 %v1792_v5  ;;  %v1797_v14 = vld [vmem:[%s1905_s29 + $0x18] sm:$0xff]   ;;  %v1799_v16 = vld [vmem:[%s1905_s29 + $0x20] sm:$0xff]   ;;  %v1801_v18 = vld [vmem:[%s1905_s29 + $0x28] sm:$0xff]  }
  0x12   : > { %1665 = vmatpush3.bf16.msra.mxu0 %v1784_v1  ;;  %1751 = vmatpush3.bf16.msra.mxu1 %v1784_v1  ;;  %v1798_v15 = vld [vmem:[%s1905_s29 + $0x98] sm:$0xff]   ;;  %v1800_v17 = vld [vmem:[%s1905_s29 + $0xa0] sm:$0xff]   ;;  %v1802_v19 = vld [vmem:[%s1905_s29 + $0xa8] sm:$0xff]  }
  0x13   : > { %1666 = vmatprep.subr.bf16.mxu0 %v1785_v2  ;;  %1744 = vmatprep.subr.bf16.mxu1 %v1785_v2  ;;  %v1803_v20 = vld [vmem:[%s1905_s29 + $0x30] sm:$0xff]   ;;  %v1805_v22 = vld [vmem:[%s1905_s29 + $0x38] sm:$0xff]   ;;  %v1807_v24 = vld [vmem:[%s1905_s29 + $0x40] sm:$0xff]  }
  0x14   : > { %v1804_v21 = vld [vmem:[%s1905_s29 + $0xb0] sm:$0xff]   ;;  %v1806_v23 = vld [vmem:[%s1905_s29 + $0xb8] sm:$0xff]   ;;  %v1808_v25 = vld [vmem:[%s1905_s29 + $0xc0] sm:$0xff]  }
  0x15   : > { %v1809_v26 = vld [vmem:[%s1905_s29 + $0x48] sm:$0xff]   ;;  %v1811_v28 = vld [vmem:[%s1905_s29 + $0x50] sm:$0xff]   ;;  %v1813_v30 = vld [vmem:[%s1905_s29 + $0x58] sm:$0xff]  }
  0x16   : > { %1667 = vmatpush3.bf16.msra.mxu0 %v1785_v2  ;;  %1752 = vmatpush3.bf16.msra.mxu1 %v1785_v2  ;;  %v1810_v27 = vld [vmem:[%s1905_s29 + $0xc8] sm:$0xff]   ;;  %v1812_v29 = vld [vmem:[%s1905_s29 + $0xd0] sm:$0xff]   ;;  %v1814_v31 = vld [vmem:[%s1905_s29 + $0xd8] sm:$0xff]  }
  0x17   : > { %1668 = vmatprep.subr.bf16.mxu0 %v1786_v3  ;;  %1745 = vmatprep.subr.bf16.mxu1 %v1786_v3  ;;  %v1815_v32 = vld [vmem:[%s1905_s29 + $0x60] sm:$0xff]   ;;  %v1817_v34 = vld [vmem:[%s1905_s29 + $0x68] sm:$0xff]   ;;  %v1819_v36 = vld [vmem:[%s1905_s29 + $0x70] sm:$0xff]  }
  0x18   : > { %v1816_v33 = vld [vmem:[%s1905_s29 + $0xe0] sm:$0xff]   ;;  %v1818_v35 = vld [vmem:[%s1905_s29 + $0xe8] sm:$0xff]   ;;  %v1820_v37 = vld [vmem:[%s1905_s29 + $0xf0] sm:$0xff]  }
  0x19   : > { %v1821_v38 = vld [vmem:[%s1905_s29 + $0x78] sm:$0xff]   ;;  %v1957_v41 = vld [vmem:[%s2173_s2] ss:$0 sm:$0xff] }
  0x1a   : > { %1669 = vmatpush3.bf16.msra.mxu0 %v1786_v3  ;;  %1753 = vmatpush3.bf16.msra.mxu1 %v1786_v3  ;;  %v1822_v39 = vld [vmem:[%s1905_s29 + $0xf8] sm:$0xff]   ;;  %v1963_v43 = vld [vmem:[%s2174_s3] ss:$0 sm:$0xff] }
  0x1b   : > { %1670 = vmatprep.subr.bf16.mxu0 %v1787_v6  ;;  %1746 = vmatprep.subr.bf16.mxu1 %v1787_v6 }
  0x1e   : > { %1671 = vmatpush3.bf16.msra.mxu0 %v1787_v6  ;;  %1754 = vmatpush3.bf16.msra.mxu1 %v1787_v6 }
  0x1f   : > { %1672 = vmatprep.subr.bf16.mxu0 %v1788_v7  ;;  %1747 = vmatprep.subr.bf16.mxu1 %v1788_v7 }
  0x22   : > { %1673 = vmatpush3.bf16.msra.mxu0 %v1788_v7  ;;  %1755 = vmatpush3.bf16.msra.mxu1 %v1788_v7 }
  0x23   : > { %1674 = vmatprep.subr.bf16.mxu0 %v1789_v8  ;;  %1748 = vmatprep.subr.bf16.mxu1 %v1789_v8 }
  0x26   : > { %1675 = vmatpush3.bf16.msra.mxu0 %v1789_v8  ;;  %1756 = vmatpush3.bf16.msra.mxu1 %v1789_v8 }
  0x27   : > { %1676 = vmatprep.subr.bf16.mxu0 %v1790_v9  ;;  %1749 = vmatprep.subr.bf16.mxu1 %v1790_v9 }
  0x2a   : > { %1677 = vmatpush3.bf16.msra.mxu0 %v1790_v9  ;;  %1757 = vmatpush3.bf16.msra.mxu1 %v1790_v9 }
  0x2d   : > { %1679 = vmatmul.mubr.bf16.vlgmr.msra.gmra.mxu0 %v1793_v10  ;;  %1711 = vmatmul.mubr.bf16.vlgmr.msra.gmra.mxu1 %v1794_v11 }
  0x2e   : > { %1682 = vmatprep.mubr.bf16.mxu0 %v1795_v12  ;;  %1714 = vmatprep.mubr.bf16.mxu1 %v1796_v13 }
  0x35   : > { %1683 = vmatmul.mubr.bf16.gmra.mxu0 %v1797_v14  ;;  %1715 = vmatmul.mubr.bf16.gmra.mxu1 %v1798_v15 }
  0x36   : > { %1686 = vmatprep.mubr.bf16.mxu0 %v1799_v16  ;;  %1718 = vmatprep.mubr.bf16.mxu1 %v1800_v17 }
  0x3d   : > { %1687 = vmatmul.mubr.bf16.gmra.mxu0 %v1801_v18  ;;  %1719 = vmatmul.mubr.bf16.gmra.mxu1 %v1802_v19 }
  0x3e   : > { %1690 = vmatprep.mubr.bf16.mxu0 %v1803_v20  ;;  %1722 = vmatprep.mubr.bf16.mxu1 %v1804_v21 }
  0x45   : > { %1691 = vmatmul.mubr.bf16.gmra.mxu0 %v1805_v22  ;;  %1723 = vmatmul.mubr.bf16.gmra.mxu1 %v1806_v23 }
  0x46   : > { %1694 = vmatprep.mubr.bf16.mxu0 %v1807_v24  ;;  %1726 = vmatprep.mubr.bf16.mxu1 %v1808_v25 }
  0x4d   : > { %1695 = vmatmul.mubr.bf16.gmra.mxu0 %v1809_v26  ;;  %1727 = vmatmul.mubr.bf16.gmra.mxu1 %v1810_v27 }
  0x4e   : > { %1698 = vmatprep.mubr.bf16.mxu0 %v1811_v28  ;;  %1730 = vmatprep.mubr.bf16.mxu1 %v1812_v29 }
  0x55   : > { %1699 = vmatmul.mubr.bf16.gmra.mxu0 %v1813_v30  ;;  %1731 = vmatmul.mubr.bf16.gmra.mxu1 %v1814_v31 }
  0x56   : > { %1702 = vmatprep.mubr.bf16.mxu0 %v1815_v32  ;;  %1734 = vmatprep.mubr.bf16.mxu1 %v1816_v33 }
  0x5d   : > { %1703 = vmatmul.mubr.bf16.gmra.mxu0 %v1817_v34  ;;  %1735 = vmatmul.mubr.bf16.gmra.mxu1 %v1818_v35 }
  0x5e   : > { %1706 = vmatprep.mubr.bf16.mxu0 %v1819_v36  ;;  %1738 = vmatprep.mubr.bf16.mxu1 %v1820_v37 }
  0x65   : > { %1707 = vmatmul.mubr.bf16.gmra.mxu0 %v1821_v38  ;;  %1739 = vmatmul.mubr.bf16.gmra.mxu1 %v1822_v39 }
  0xed   : > { %v1680_v40 = vpop.f32.mrf.mxu0  ;;  %v1712_v42 = vpop.f32.mrf.mxu1 }
  0xee   : > { %v1246_v46 = vmul.f32 %v1680_v40, %v1957_v41  ;;  %v1278_v47 = vmul.f32 %v1712_v42, %v1957_v41 }
  0xef   : > { %v787_v44 = vpop.f32.mrf.mxu0  ;;  %v915_v45 = vpop.f32.mrf.mxu1 }
  0xf0   : > { %v1317_v50 = vadd.f32 %v1963_v43, %v1246_v46  ;;  %v1349_v51 = vadd.f32 %v1963_v43, %v1278_v47  ;;  %v1244_v52 = vmul.f32 %v1957_v41, %v787_v44  ;;  %v1276_v53 = vmul.f32 %v1957_v41, %v915_v45 }
  0xf1   : > { %v1681_v48 = vpop.f32.mrf.mxu0  ;;  %v1713_v49 = vpop.f32.mrf.mxu1 }
  0xf2   : > { %1381 = vst [vmem:[%s1970_s25 + $0x10] sm:$0xff] %v1317_v50  ;;  %1413 = vst [vmem:[%s1970_s25 + $0x110] sm:$0xff] %v1349_v51  ;;  %v1315_v56 = vadd.f32 %v1963_v43, %v1244_v52  ;;  %v1347_v57 = vadd.f32 %v1963_v43, %v1276_v53  ;;  %v1247_v58 = vmul.f32 %v1681_v48, %v1957_v41 }
  0xf3   : > { %v790_v54 = vpop.f32.mrf.mxu0  ;;  %v918_v55 = vpop.f32.mrf.mxu1  ;;  %v1279_v59 = vmul.f32 %v1713_v49, %v1957_v41 }
  0xf4   : > { %1379 = vst [vmem:[%s1970_s25] sm:$0xff] %v1315_v56  ;;  %1411 = vst [vmem:[%s1970_s25 + $0x100] sm:$0xff] %v1347_v57  ;;  %v1245_v62 = vmul.f32 %v1957_v41, %v790_v54  ;;  %v1277_v63 = vmul.f32 %v1957_v41, %v918_v55  ;;  %v1318_v0 = vadd.f32 %v1963_v43, %v1247_v58 }
  0xf5   : > { %v1684_v60 = vpop.f32.mrf.mxu0  ;;  %v1716_v61 = vpop.f32.mrf.mxu1  ;;  %v1350_v1 = vadd.f32 %v1963_v43, %v1279_v59 }
  0xf6   : > { %v1316_v4 = vadd.f32 %v1963_v43, %v1245_v62  ;;  %v1348_v5 = vadd.f32 %v1963_v43, %v1277_v63  ;;  %v1250_v6 = vmul.f32 %v1684_v60, %v1957_v41  ;;  %v1282_v7 = vmul.f32 %v1716_v61, %v1957_v41  ;;  %1382 = vst [vmem:[%s1970_s25 + $0x18] sm:$0xff] %v1318_v0 }
  0xf7   : > { %v803_v2 = vpop.f32.mrf.mxu0  ;;  %v931_v3 = vpop.f32.mrf.mxu1  ;;  %1414 = vst [vmem:[%s1970_s25 + $0x118] sm:$0xff] %v1350_v1 }
  0xf8   : > { %1380 = vst [vmem:[%s1970_s25 + $0x8] sm:$0xff] %v1316_v4  ;;  %1412 = vst [vmem:[%s1970_s25 + $0x108] sm:$0xff] %v1348_v5  ;;  %v1321_v10 = vadd.f32 %v1963_v43, %v1250_v6  ;;  %v1353_v11 = vadd.f32 %v1963_v43, %v1282_v7  ;;  %v1248_v12 = vmul.f32 %v1957_v41, %v803_v2 }
  0xf9   : > { %v1685_v8 = vpop.f32.mrf.mxu0  ;;  %v1717_v9 = vpop.f32.mrf.mxu1  ;;  %v1280_v13 = vmul.f32 %v1957_v41, %v931_v3 }
  0xfa   : > { %1385 = vst [vmem:[%s1970_s25 + $0x30] sm:$0xff] %v1321_v10  ;;  %1417 = vst [vmem:[%s1970_s25 + $0x130] sm:$0xff] %v1353_v11  ;;  %v1251_v16 = vmul.f32 %v1685_v8, %v1957_v41  ;;  %v1283_v17 = vmul.f32 %v1717_v9, %v1957_v41  ;;  %v1319_v18 = vadd.f32 %v1963_v43, %v1248_v12 }
  0xfb   : > { %v806_v14 = vpop.f32.mrf.mxu0  ;;  %v934_v15 = vpop.f32.mrf.mxu1  ;;  %v1351_v19 = vadd.f32 %v1963_v43, %v1280_v13 }
  0xfc   : > { %v1322_v22 = vadd.f32 %v1963_v43, %v1251_v16  ;;  %v1354_v23 = vadd.f32 %v1963_v43, %v1283_v17  ;;  %v1249_v24 = vmul.f32 %v1957_v41, %v806_v14  ;;  %v1281_v25 = vmul.f32 %v1957_v41, %v934_v15  ;;  %1383 = vst [vmem:[%s1970_s25 + $0x20] sm:$0xff] %v1319_v18 }
  0xfd   : > { %v1688_v20 = vpop.f32.mrf.mxu0  ;;  %v1720_v21 = vpop.f32.mrf.mxu1  ;;  %1415 = vst [vmem:[%s1970_s25 + $0x120] sm:$0xff] %v1351_v19 }
  0xfe   : > { %1386 = vst [vmem:[%s1970_s25 + $0x38] sm:$0xff] %v1322_v22  ;;  %1418 = vst [vmem:[%s1970_s25 + $0x138] sm:$0xff] %v1354_v23  ;;  %v1320_v28 = vadd.f32 %v1963_v43, %v1249_v24  ;;  %v1352_v29 = vadd.f32 %v1963_v43, %v1281_v25  ;;  %v1254_v30 = vmul.f32 %v1688_v20, %v1957_v41 }
  0xff   : > { %v819_v26 = vpop.f32.mrf.mxu0  ;;  %v947_v27 = vpop.f32.mrf.mxu1  ;;  %v1286_v31 = vmul.f32 %v1720_v21, %v1957_v41 }
 0x100   : > { %1384 = vst [vmem:[%s1970_s25 + $0x28] sm:$0xff] %v1320_v28  ;;  %1416 = vst [vmem:[%s1970_s25 + $0x128] sm:$0xff] %v1352_v29  ;;  %v1252_v34 = vmul.f32 %v1957_v41, %v819_v26  ;;  %v1284_v35 = vmul.f32 %v1957_v41, %v947_v27  ;;  %v1325_v36 = vadd.f32 %v1963_v43, %v1254_v30 }
 0x101   : > { %v1689_v32 = vpop.f32.mrf.mxu0  ;;  %v1721_v33 = vpop.f32.mrf.mxu1  ;;  %v1357_v37 = vadd.f32 %v1963_v43, %v1286_v31 }
 0x102   : > { %v1323_v40 = vadd.f32 %v1963_v43, %v1252_v34  ;;  %v1355_v42 = vadd.f32 %v1963_v43, %v1284_v35  ;;  %v1255_v44 = vmul.f32 %v1689_v32, %v1957_v41  ;;  %v1287_v45 = vmul.f32 %v1721_v33, %v1957_v41  ;;  %1389 = vst [vmem:[%s1970_s25 + $0x50] sm:$0xff] %v1325_v36 }
 0x103   : > { %v822_v38 = vpop.f32.mrf.mxu0  ;;  %v950_v39 = vpop.f32.mrf.mxu1  ;;  %1421 = vst [vmem:[%s1970_s25 + $0x150] sm:$0xff] %v1357_v37 }
 0x104   : > { %1387 = vst [vmem:[%s1970_s25 + $0x40] sm:$0xff] %v1323_v40  ;;  %1419 = vst [vmem:[%s1970_s25 + $0x140] sm:$0xff] %v1355_v42  ;;  %v1326_v48 = vadd.f32 %v1963_v43, %v1255_v44  ;;  %v1358_v49 = vadd.f32 %v1963_v43, %v1287_v45  ;;  %v1253_v50 = vmul.f32 %v1957_v41, %v822_v38 }
 0x105   : > { %v1692_v46 = vpop.f32.mrf.mxu0  ;;  %v1724_v47 = vpop.f32.mrf.mxu1  ;;  %v1285_v51 = vmul.f32 %v1957_v41, %v950_v39 }
 0x106   : > { %1390 = vst [vmem:[%s1970_s25 + $0x58] sm:$0xff] %v1326_v48  ;;  %1422 = vst [vmem:[%s1970_s25 + $0x158] sm:$0xff] %v1358_v49  ;;  %v1258_v54 = vmul.f32 %v1692_v46, %v1957_v41  ;;  %v1290_v55 = vmul.f32 %v1724_v47, %v1957_v41  ;;  %v1324_v56 = vadd.f32 %v1963_v43, %v1253_v50 }
 0x107   : > { %v835_v52 = vpop.f32.mrf.mxu0  ;;  %v963_v53 = vpop.f32.mrf.mxu1  ;;  %v1356_v57 = vadd.f32 %v1963_v43, %v1285_v51 }
 0x108   : > { %v1329_v60 = vadd.f32 %v1963_v43, %v1258_v54  ;;  %v1361_v61 = vadd.f32 %v1963_v43, %v1290_v55  ;;  %v1256_v62 = vmul.f32 %v1957_v41, %v835_v52  ;;  %v1288_v63 = vmul.f32 %v1957_v41, %v963_v53  ;;  %1388 = vst [vmem:[%s1970_s25 + $0x48] sm:$0xff] %v1324_v56 }
 0x109   : > { %v1693_v58 = vpop.f32.mrf.mxu0  ;;  %v1725_v59 = vpop.f32.mrf.mxu1  ;;  %1420 = vst [vmem:[%s1970_s25 + $0x148] sm:$0xff] %v1356_v57 }
 0x10a   : > { %1393 = vst [vmem:[%s1970_s25 + $0x70] sm:$0xff] %v1329_v60  ;;  %1425 = vst [vmem:[%s1970_s25 + $0x170] sm:$0xff] %v1361_v61  ;;  %v1327_v2 = vadd.f32 %v1963_v43, %v1256_v62  ;;  %v1359_v3 = vadd.f32 %v1963_v43, %v1288_v63  ;;  %v1259_v4 = vmul.f32 %v1693_v58, %v1957_v41 }
 0x10b   : > { %v838_v0 = vpop.f32.mrf.mxu0  ;;  %v966_v1 = vpop.f32.mrf.mxu1  ;;  %v1291_v5 = vmul.f32 %v1725_v59, %v1957_v41 }
 0x10c   : > { %1391 = vst [vmem:[%s1970_s25 + $0x60] sm:$0xff] %v1327_v2  ;;  %1423 = vst [vmem:[%s1970_s25 + $0x160] sm:$0xff] %v1359_v3  ;;  %v1257_v8 = vmul.f32 %v1957_v41, %v838_v0  ;;  %v1289_v9 = vmul.f32 %v1957_v41, %v966_v1  ;;  %v1330_v10 = vadd.f32 %v1963_v43, %v1259_v4 }
 0x10d   : > { %v1696_v6 = vpop.f32.mrf.mxu0  ;;  %v1728_v7 = vpop.f32.mrf.mxu1  ;;  %v1362_v11 = vadd.f32 %v1963_v43, %v1291_v5 }
 0x10e   : > { %v1328_v14 = vadd.f32 %v1963_v43, %v1257_v8  ;;  %v1360_v15 = vadd.f32 %v1963_v43, %v1289_v9  ;;  %v1262_v16 = vmul.f32 %v1696_v6, %v1957_v41  ;;  %v1294_v17 = vmul.f32 %v1728_v7, %v1957_v41  ;;  %1394 = vst [vmem:[%s1970_s25 + $0x78] sm:$0xff] %v1330_v10 }
 0x10f   : > { %v851_v12 = vpop.f32.mrf.mxu0  ;;  %v979_v13 = vpop.f32.mrf.mxu1  ;;  %1426 = vst [vmem:[%s1970_s25 + $0x178] sm:$0xff] %v1362_v11 }
 0x110   : > { %1392 = vst [vmem:[%s1970_s25 + $0x68] sm:$0xff] %v1328_v14  ;;  %1424 = vst [vmem:[%s1970_s25 + $0x168] sm:$0xff] %v1360_v15  ;;  %v1333_v20 = vadd.f32 %v1963_v43, %v1262_v16  ;;  %v1365_v21 = vadd.f32 %v1963_v43, %v1294_v17  ;;  %v1260_v22 = vmul.f32 %v1957_v41, %v851_v12 }
 0x111   : > { %v1697_v18 = vpop.f32.mrf.mxu0  ;;  %v1729_v19 = vpop.f32.mrf.mxu1  ;;  %v1292_v23 = vmul.f32 %v1957_v41, %v979_v13 }
 0x112   : > { %1397 = vst [vmem:[%s1970_s25 + $0x90] sm:$0xff] %v1333_v20  ;;  %1429 = vst [vmem:[%s1970_s25 + $0x190] sm:$0xff] %v1365_v21  ;;  %v1263_v26 = vmul.f32 %v1697_v18, %v1957_v41  ;;  %v1295_v27 = vmul.f32 %v1729_v19, %v1957_v41  ;;  %v1331_v28 = vadd.f32 %v1963_v43, %v1260_v22 }
 0x113   : > { %v854_v24 = vpop.f32.mrf.mxu0  ;;  %v982_v25 = vpop.f32.mrf.mxu1  ;;  %v1363_v29 = vadd.f32 %v1963_v43, %v1292_v23 }
 0x114   : > { %v1334_v32 = vadd.f32 %v1963_v43, %v1263_v26  ;;  %v1366_v33 = vadd.f32 %v1963_v43, %v1295_v27  ;;  %v1261_v34 = vmul.f32 %v1957_v41, %v854_v24  ;;  %v1293_v35 = vmul.f32 %v1957_v41, %v982_v25  ;;  %1395 = vst [vmem:[%s1970_s25 + $0x80] sm:$0xff] %v1331_v28 }
 0x115   : > { %v1700_v30 = vpop.f32.mrf.mxu0  ;;  %v1732_v31 = vpop.f32.mrf.mxu1  ;;  %1427 = vst [vmem:[%s1970_s25 + $0x180] sm:$0xff] %v1363_v29 }
 0x116   : > { %1398 = vst [vmem:[%s1970_s25 + $0x98] sm:$0xff] %v1334_v32  ;;  %1430 = vst [vmem:[%s1970_s25 + $0x198] sm:$0xff] %v1366_v33  ;;  %v1332_v38 = vadd.f32 %v1963_v43, %v1261_v34  ;;  %v1364_v39 = vadd.f32 %v1963_v43, %v1293_v35  ;;  %v1266_v40 = vmul.f32 %v1700_v30, %v1957_v41 }
 0x117   : > { %v867_v36 = vpop.f32.mrf.mxu0  ;;  %v995_v37 = vpop.f32.mrf.mxu1  ;;  %v1298_v42 = vmul.f32 %v1732_v31, %v1957_v41 }
 0x118   : > { %1396 = vst [vmem:[%s1970_s25 + $0x88] sm:$0xff] %v1332_v38  ;;  %1428 = vst [vmem:[%s1970_s25 + $0x188] sm:$0xff] %v1364_v39  ;;  %v1264_v46 = vmul.f32 %v1957_v41, %v867_v36  ;;  %v1296_v47 = vmul.f32 %v1957_v41, %v995_v37  ;;  %v1337_v48 = vadd.f32 %v1963_v43, %v1266_v40 }
 0x119   : > { %v1701_v44 = vpop.f32.mrf.mxu0  ;;  %v1733_v45 = vpop.f32.mrf.mxu1  ;;  %v1369_v49 = vadd.f32 %v1963_v43, %v1298_v42 }
 0x11a   : > { %v1335_v52 = vadd.f32 %v1963_v43, %v1264_v46  ;;  %v1367_v53 = vadd.f32 %v1963_v43, %v1296_v47  ;;  %v1267_v54 = vmul.f32 %v1701_v44, %v1957_v41  ;;  %v1299_v55 = vmul.f32 %v1733_v45, %v1957_v41  ;;  %1401 = vst [vmem:[%s1970_s25 + $0xb0] sm:$0xff] %v1337_v48 }
 0x11b   : > { %v870_v50 = vpop.f32.mrf.mxu0  ;;  %v998_v51 = vpop.f32.mrf.mxu1  ;;  %1433 = vst [vmem:[%s1970_s25 + $0x1b0] sm:$0xff] %v1369_v49 }
 0x11c   : > { %1399 = vst [vmem:[%s1970_s25 + $0xa0] sm:$0xff] %v1335_v52  ;;  %1431 = vst [vmem:[%s1970_s25 + $0x1a0] sm:$0xff] %v1367_v53  ;;  %v1338_v58 = vadd.f32 %v1963_v43, %v1267_v54  ;;  %v1370_v59 = vadd.f32 %v1963_v43, %v1299_v55  ;;  %v1265_v60 = vmul.f32 %v1957_v41, %v870_v50 }
 0x11d   : > { %v1704_v56 = vpop.f32.mrf.mxu0  ;;  %v1736_v57 = vpop.f32.mrf.mxu1  ;;  %v1297_v61 = vmul.f32 %v1957_v41, %v998_v51 }
 0x11e   : > { %1402 = vst [vmem:[%s1970_s25 + $0xb8] sm:$0xff] %v1338_v58  ;;  %1434 = vst [vmem:[%s1970_s25 + $0x1b8] sm:$0xff] %v1370_v59  ;;  %v1270_v0 = vmul.f32 %v1704_v56, %v1957_v41  ;;  %v1302_v1 = vmul.f32 %v1736_v57, %v1957_v41  ;;  %v1336_v2 = vadd.f32 %v1963_v43, %v1265_v60 }
 0x11f   : > { %v883_v62 = vpop.f32.mrf.mxu0  ;;  %v1011_v63 = vpop.f32.mrf.mxu1  ;;  %v1368_v3 = vadd.f32 %v1963_v43, %v1297_v61 }
 0x120   : > { %v1341_v6 = vadd.f32 %v1963_v43, %v1270_v0  ;;  %v1373_v7 = vadd.f32 %v1963_v43, %v1302_v1  ;;  %v1268_v8 = vmul.f32 %v1957_v41, %v883_v62  ;;  %v1300_v9 = vmul.f32 %v1957_v41, %v1011_v63  ;;  %1400 = vst [vmem:[%s1970_s25 + $0xa8] sm:$0xff] %v1336_v2 }
 0x121   : > { %v1705_v4 = vpop.f32.mrf.mxu0  ;;  %v1737_v5 = vpop.f32.mrf.mxu1  ;;  %1432 = vst [vmem:[%s1970_s25 + $0x1a8] sm:$0xff] %v1368_v3 }
 0x122   : > { %1405 = vst [vmem:[%s1970_s25 + $0xd0] sm:$0xff] %v1341_v6  ;;  %1437 = vst [vmem:[%s1970_s25 + $0x1d0] sm:$0xff] %v1373_v7  ;;  %v1339_v12 = vadd.f32 %v1963_v43, %v1268_v8  ;;  %v1371_v13 = vadd.f32 %v1963_v43, %v1300_v9  ;;  %v1271_v14 = vmul.f32 %v1705_v4, %v1957_v41 }
 0x123   : > { %v886_v10 = vpop.f32.mrf.mxu0  ;;  %v1014_v11 = vpop.f32.mrf.mxu1  ;;  %v1303_v15 = vmul.f32 %v1737_v5, %v1957_v41 }
 0x124   : > { %1403 = vst [vmem:[%s1970_s25 + $0xc0] sm:$0xff] %v1339_v12  ;;  %1435 = vst [vmem:[%s1970_s25 + $0x1c0] sm:$0xff] %v1371_v13  ;;  %v1269_v18 = vmul.f32 %v1957_v41, %v886_v10  ;;  %v1301_v19 = vmul.f32 %v1957_v41, %v1014_v11  ;;  %v1342_v20 = vadd.f32 %v1963_v43, %v1271_v14 }
 0x125   : > { %v1708_v16 = vpop.f32.mrf.mxu0  ;;  %v1740_v17 = vpop.f32.mrf.mxu1  ;;  %v1374_v21 = vadd.f32 %v1963_v43, %v1303_v15 }
 0x126   : > { %v1340_v24 = vadd.f32 %v1963_v43, %v1269_v18  ;;  %v1372_v25 = vadd.f32 %v1963_v43, %v1301_v19  ;;  %v1274_v26 = vmul.f32 %v1708_v16, %v1957_v41  ;;  %v1306_v27 = vmul.f32 %v1740_v17, %v1957_v41  ;;  %1406 = vst [vmem:[%s1970_s25 + $0xd8] sm:$0xff] %v1342_v20 }
 0x127   : > { %v899_v22 = vpop.f32.mrf.mxu0  ;;  %v1027_v23 = vpop.f32.mrf.mxu1  ;;  %1438 = vst [vmem:[%s1970_s25 + $0x1d8] sm:$0xff] %v1374_v21 }
 0x128   : > { %1404 = vst [vmem:[%s1970_s25 + $0xc8] sm:$0xff] %v1340_v24  ;;  %1436 = vst [vmem:[%s1970_s25 + $0x1c8] sm:$0xff] %v1372_v25  ;;  %v1345_v30 = vadd.f32 %v1963_v43, %v1274_v26  ;;  %v1377_v31 = vadd.f32 %v1963_v43, %v1306_v27  ;;  %v1272_v32 = vmul.f32 %v1957_v41, %v899_v22 }
 0x129   : > { %v1709_v28 = vpop.f32.mrf.mxu0  ;;  %v1741_v29 = vpop.f32.mrf.mxu1  ;;  %v1304_v33 = vmul.f32 %v1957_v41, %v1027_v23 }
 0x12a   : > { %1409 = vst [vmem:[%s1970_s25 + $0xf0] sm:$0xff] %v1345_v30  ;;  %1441 = vst [vmem:[%s1970_s25 + $0x1f0] sm:$0xff] %v1377_v31  ;;  %v1275_v36 = vmul.f32 %v1709_v28, %v1957_v41  ;;  %v1307_v37 = vmul.f32 %v1741_v29, %v1957_v41  ;;  %v1343_v38 = vadd.f32 %v1963_v43, %v1272_v32 }
 0x12b   : > { %v902_v34 = vpop.f32.mrf.mxu0  ;;  %v1030_v35 = vpop.f32.mrf.mxu1  ;;  %v1375_v39 = vadd.f32 %v1963_v43, %v1304_v33 }
 0x12c   : > { %v1346_v40 = vadd.f32 %v1963_v43, %v1275_v36  ;;  %v1378_v42 = vadd.f32 %v1963_v43, %v1307_v37  ;;  %v1273_v44 = vmul.f32 %v1957_v41, %v902_v34  ;;  %v1305_v45 = vmul.f32 %v1957_v41, %v1030_v35  ;;  %1407 = vst [vmem:[%s1970_s25 + $0xe0] sm:$0xff] %v1343_v38 }
 0x12d   : > { %1439 = vst [vmem:[%s1970_s25 + $0x1e0] sm:$0xff] %v1375_v39 }
 0x12e   : > { %1410 = vst [vmem:[%s1970_s25 + $0xf8] sm:$0xff] %v1346_v40  ;;  %1442 = vst [vmem:[%s1970_s25 + $0x1f8] sm:$0xff] %v1378_v42  ;;  %v1344_v46 = vadd.f32 %v1963_v43, %v1273_v44  ;;  %v1376_v47 = vadd.f32 %v1963_v43, %v1305_v45 }
 0x130   : > { %1408 = vst [vmem:[%s1970_s25 + $0xe8] sm:$0xff] %v1344_v46  ;;  %1440 = vst [vmem:[%s1970_s25 + $0x1e8] sm:$0xff] %v1376_v47 }
 0x131 PF: > { %s14_s17 = sadd.s32 1, %s1845_s17   ;;  %s2176_s15 = smov %s1841_s16 }
 0x132   : > { %p11_p5 = scmp.ge.s32.totalorder %s14_s17, 14   ;;  %s2177_s16 = smov %s2179_s18 }
 0x134   :  { %13 = sbr.rel (!%p11_p5) target bundleno = 2 (0x2), region = 83 }

</bundles_post_ra>
